<compile_context>
chip_gen: v7x
topology: tpu7x:2x2x1
jax: 0.10.0
libtpu: 0.0.40
codegen_flags: <defaults>
</compile_context>

<pallas_src>
import functools

import jax
import jax.numpy as jnp
from jax.experimental import pallas as pl
from jax.experimental.pallas import tpu as pltpu


def _round_up(x, m):
    return (x + m - 1) // m * m


def _pad2d(x, rows, cols):
    return jnp.pad(x, ((0, rows - x.shape[0]), (0, cols - x.shape[1])))


def _choose_tiles(n_pad):
    """Row tile (TM) up to 512, reduction tile (TK) up to 2048, both dividing n_pad.
    Prefer >=2 row tiles so the 'parallel' axis can feed both v7x TensorCores."""
    tm = 512
    while tm > 128 and (n_pad % tm != 0 or n_pad // tm < 2):
        tm //= 2
    tk = 2048
    while tk > 128 and n_pad % tk != 0:
        tk //= 2
    return tm, tk


# ----------------------------------------------------------------------------
# Kernel 1: layer-0 feature projection  H1 = X @ W   (row-tiled, W resident)
# ----------------------------------------------------------------------------
def _project_kernel(x_ref, w_ref, o_ref):
    o_ref[...] = jnp.dot(
        x_ref[...], w_ref[...], preferred_element_type=jnp.float32
    ).astype(o_ref.dtype)


def project(x, w, *, tm):
    n_pad, f_in = x.shape
    f_out = w.shape[1]
    return pl.pallas_call(
        _project_kernel,
        out_shape=jax.ShapeDtypeStruct((n_pad, f_out), jnp.bfloat16),
        grid_spec=pltpu.PrefetchScalarGridSpec(
            num_scalar_prefetch=0,
            grid=(n_pad // tm,),
            in_specs=[
                pl.BlockSpec((tm, f_in), lambda i: (i, 0)),
                pl.BlockSpec((f_in, f_out), lambda i: (0, 0)),
            ],
            out_specs=pl.BlockSpec((tm, f_out), lambda i: (i, 0)),
        ),
        compiler_params=pltpu.CompilerParams(dimension_semantics=("parallel",)),
    )(x, w)


# ----------------------------------------------------------------------------
# Kernel 2: aggregation + fused next-layer projection
#   out = (A_hat @ H1 + b)                          (last layer, f32)
#   out = relu(A_hat @ H1 + b) @ W_next  -> bf16    (non-last layers)
# ----------------------------------------------------------------------------
def _aggregate_kernel(*refs, apply_relu, fuse_next, resident_h, tk):
    if fuse_next:
        a_ref, h_ref, b_ref, w_ref, o_ref, acc_ref = refs
    else:
        a_ref, h_ref, b_ref, o_ref, acc_ref = refs
        w_ref = None

    k = pl.program_id(1)

    @pl.when(k == 0)
    def _():
        acc_ref[...] = jnp.zeros_like(acc_ref)

    if resident_h:
        start = pl.multiple_of(k * tk, tk)
        h_blk = h_ref[pl.ds(start, tk), :]
    else:
        h_blk = h_ref[...]

    acc_ref[...] += jnp.dot(a_ref[...], h_blk, preferred_element_type=jnp.float32)

    @pl.when(k == pl.num_programs(1) - 1)
    def _():
        out = acc_ref[...] + b_ref[...]
        if apply_relu:
            out = jnp.maximum(out, 0.0)
        if fuse_next:
            # Next layer's projection rides the otherwise idle MXU (kernel is DMA-bound).
            out = jnp.dot(
                out.astype(jnp.bfloat16), w_ref[...],
                preferred_element_type=jnp.float32,
            )
        o_ref[...] = out.astype(o_ref.dtype)


def aggregate(a_hat, h1, b, w_next, *, apply_relu, out_dtype, tm, tk, resident_h):
    n_pad = a_hat.shape[0]
    f_out = h1.shape[1]
    fuse_next = w_next is not None

    kernel = functools.partial(
        _aggregate_kernel,
        apply_relu=apply_relu, fuse_next=fuse_next, resident_h=resident_h, tk=tk,
    )

    in_specs = [
        pl.BlockSpec((tm, tk), lambda i, k: (i, k)),
        (pl.BlockSpec((n_pad, f_out), lambda i, k: (0, 0)) if resident_h
         else pl.BlockSpec((tk, f_out), lambda i, k: (k, 0))),
        pl.BlockSpec((1, f_out), lambda i, k: (0, 0)),
    ]
    args = [a_hat, h1, b]
    if fuse_next:
        out_cols = w_next.shape[1]
        in_specs.append(pl.BlockSpec((f_out, out_cols), lambda i, k: (0, 0)))
        args.append(w_next)
    else:
        out_cols = f_out

    # Rough VMEM need -> explicit scoped limit (v5e default is only 16 MiB; stay well
    # under v7x's 64 MiB physical per-TC VMEM).
    need = 2 * tm * tk * 2                                            # A (double-buffered)
    need += (2 * n_pad * f_out * 2) if resident_h else (2 * tk * f_out * 2)  # H1
    need += 2 * tm * out_cols * jnp.dtype(out_dtype).itemsize         # output
    need += tm * f_out * 4                                            # f32 accumulator
    need += 4 * f_out * (f_out * 2 + 8)                               # W_next + bias (generous)
    vmem_limit = int(min(max(need + (8 << 20), 32 << 20), 56 << 20))

    return pl.pallas_call(
        kernel,
        out_shape=jax.ShapeDtypeStruct((n_pad, out_cols), out_dtype),
        grid_spec=pltpu.PrefetchScalarGridSpec(
            num_scalar_prefetch=0,
            grid=(n_pad // tm, n_pad // tk),        # reduction axis last
            in_specs=in_specs,
            out_specs=pl.BlockSpec((tm, out_cols), lambda i, k: (i, 0)),
            scratch_shapes=[pltpu.VMEM((tm, f_out), jnp.float32)],
        ),
        compiler_params=pltpu.CompilerParams(
            dimension_semantics=("parallel", "arbitrary"),
            vmem_limit_bytes=vmem_limit,
        ),
    )(*args)


# ----------------------------------------------------------------------------
# GCN forward
# ----------------------------------------------------------------------------
def gcn_forward(a_hat, feat, params):
    """params: list of (W, b). ReLU on all layers except the last (GraphConv default)."""
    n = feat.shape[0]
    n_layers = len(params)
    out_dim = params[-1][0].shape[1]

    f_pad = _round_up(max([feat.shape[1]] + [w.shape[1] for w, _ in params]), 128)
    n_pad = _round_up(n, 128)
    tm, tk = _choose_tiles(n_pad)
    tm_proj = 512
    while n_pad % tm_proj:
        tm_proj //= 2

    # Keep H1 fully VMEM-resident in the aggregation while its double-buffered
    # footprint stays under 16 MiB; otherwise fall back to TK-tiled re-streaming.
    resident_h = 2 * n_pad * f_pad * 2 <= 16 * 2**20

    a_p = _pad2d(a_hat, n_pad, n_pad).astype(jnp.bfloat16)
    x_p = _pad2d(feat, n_pad, f_pad).astype(jnp.bfloat16)
    w_pads = [_pad2d(w, f_pad, f_pad).astype(jnp.bfloat16) for w, _ in params]
    b_pads = [_pad2d(b, 1, f_pad).astype(jnp.float32) for _, b in params]

    # Layer-0 projection computed once; subsequent projections are fused into the
    # previous layer's aggregation epilogue.
    h1 = project(x_p, w_pads[0], tm=tm_proj)

    for i in range(n_layers):
        last = i == n_layers - 1
        h1 = aggregate(
            a_p, h1, b_pads[i],
            None if last else w_pads[i + 1],
            apply_relu=not last,
            out_dtype=jnp.float32 if last else jnp.bfloat16,
            tm=tm, tk=tk, resident_h=resident_h,
        )
    return h1[:n, :out_dim]


def init_gcn_params(key, n_layers, in_dim, hid_dim, out_dim):
    """Xavier-uniform weights (DGL GraphConv); small nonzero bias to exercise the
    bias epilogue (DGL initializes bias to zero, but any value is valid forward)."""
    dims = [in_dim] + [hid_dim] * (n_layers - 1) + [out_dim]
    params = []
    keys = jax.random.split(key, 2 * n_layers)
    for li in range(n_layers):
        f_in, f_out = dims[li], dims[li + 1]
        bound = (6.0 / (f_in + f_out)) ** 0.5
        w = jax.random.uniform(keys[2 * li], (f_in, f_out), jnp.float32, -bound, bound)
        b = 0.01 * jax.random.normal(keys[2 * li + 1], (1, f_out), jnp.float32)
        params.append((w, b))
    return params


def build_normalized_adjacency(key, n):
    """Random undirected graph with self loops, symmetric normalization D^-1/2 A D^-1/2."""
    adj = (jax.random.uniform(key, (n, n)) < 0.1).astype(jnp.float32)
    adj = jnp.maximum(adj, adj.T)
    adj = adj.at[jnp.arange(n), jnp.arange(n)].set(1.0)  # self loops (no 0-in-degree)
    deg = adj.sum(axis=1)
    d_inv_sqrt = 1.0 / jnp.sqrt(deg)
    return adj * d_inv_sqrt[:, None] * d_inv_sqrt[None, :]


if __name__ == "__main__":
    key = jax.random.PRNGKey(0)
    k_adj, k_feat, k_par = jax.random.split(key, 3)

    # Small shapes consistent with the module (N not a tile multiple: exercises padding).
    N, in_dim, hid_dim, out_dim, n_layers = 200, 16, 32, 8, 3

    a_hat = build_normalized_adjacency(k_adj, N)
    feat = jax.random.normal(k_feat, (N, in_dim), jnp.float32)
    params = init_gcn_params(k_par, n_layers, in_dim, hid_dim, out_dim)

    out = jax.jit(gcn_forward)(a_hat, feat, params)
    out = jax.block_until_ready(out)
    assert out.shape == (N, out_dim) and out.dtype == jnp.float32

    # Reference with the same bf16-input / f32-accumulation numerics as the kernels.
    a_bf = a_hat.astype(jnp.bfloat16)
    w_bf = [w.astype(jnp.bfloat16) for w, _ in params]
    h1 = jnp.dot(feat.astype(jnp.bfloat16), w_bf[0],
                 preferred_element_type=jnp.float32).astype(jnp.bfloat16)
    ref = None
    for i, (_, b) in enumerate(params):
        agg = jnp.dot(a_bf, h1, preferred_element_type=jnp.float32) + b
        if i != n_layers - 1:
            act = jnp.maximum(agg, 0.0).astype(jnp.bfloat16)
            h1 = jnp.dot(act, w_bf[i + 1],
                         preferred_element_type=jnp.float32).astype(jnp.bfloat16)
        else:
            ref = agg
    assert jnp.allclose(out, ref, atol=1e-2, rtol=1e-2)

    print("KERNEL_OK")
</pallas_src>

<mosaic_0001>
module attributes {stable_mosaic.version = 11 : i64} {
  func.func @_aggregate_kernel(%arg0: i32, %arg1: i32, %arg2: memref<128x256xbf16, #tpu.memory_space<vmem>>, %arg3: memref<256x128xbf16, #tpu.memory_space<vmem>>, %arg4: memref<1x128xf32, #tpu.memory_space<vmem>>, %arg5: memref<128x128xf32, #tpu.memory_space<vmem>>, %arg6: memref<128x128xf32, #tpu.memory_space<vmem>>) attributes {dimension_semantics = [#tpu.dimension_semantics<parallel>, #tpu.dimension_semantics<arbitrary>], iteration_bounds = array<i64: 2, 1>, scalar_prefetch = 0 : i64, scratch_operands = 1 : i64, tpu.core_type = #tpu.core_type<tc>, window_params = [{transform_indices = @transform_0, window_bounds = array<i64: 128, 256>}, {pipeline_mode = #tpu.pipeline_mode<synchronous>, transform_indices = @transform_1, window_bounds = array<i64: 256, 128>}, {pipeline_mode = #tpu.pipeline_mode<synchronous>, transform_indices = @transform_2, window_bounds = array<i64: 1, 128>}, {transform_indices = @transform_3, window_bounds = array<i64: 128, 128>}]} {
    %c0_i32 = arith.constant 0 : i32
    %0 = arith.cmpi eq, %arg1, %c0_i32 : i32
    %1 = arith.extui %0 : i1 to i32
    %c0_i32_0 = arith.constant 0 : i32
    %2 = arith.cmpi ne, %1, %c0_i32_0 : i32
    scf.if %2 {
      %cst_9 = arith.constant 0.000000e+00 : f32
      %15 = vector.broadcast %cst_9 : f32 to vector<128x128xf32>
      %c0_10 = arith.constant 0 : index
      %c0_11 = arith.constant 0 : index
      %16 = vector.load %arg6[%c0_10, %c0_11] : memref<128x128xf32, #tpu.memory_space<vmem>>, vector<128x128xf32>
      tpu.vector_store %arg6[%c0_10, %c0_11], %15 {strides = array<i32>} : memref<128x128xf32, #tpu.memory_space<vmem>>, vector<128x128xf32>,
    } else {
    }
    %c256_i32 = arith.constant 256 : i32
    %3 = arith.muli %arg1, %c256_i32 : i32
    %4 = tpu.assume_multiple %3, 256 : i32
    %5 = arith.index_cast %4 : i32 to index
    %c0 = arith.constant 0 : index
    %6 = vector.load %arg3[%5, %c0] : memref<256x128xbf16, #tpu.memory_space<vmem>>, vector<256x128xbf16>
    %c0_1 = arith.constant 0 : index
    %c0_2 = arith.constant 0 : index
    %7 = vector.load %arg6[%c0_1, %c0_2] : memref<128x128xf32, #tpu.memory_space<vmem>>, vector<128x128xf32>
    %c0_3 = arith.constant 0 : index
    %c0_4 = arith.constant 0 : index
    %8 = vector.load %arg2[%c0_3, %c0_4] : memref<128x256xbf16, #tpu.memory_space<vmem>>, vector<128x256xbf16>
    %cst = arith.constant dense<0.000000e+00> : vector<128x128xf32>
    %9 = tpu.matmul %8, %6, %cst {dimension_numbers = #tpu.dot_dimension_numbers<[1], [0], [0], [1], [0, 0, 1, 1], [], []>} : vector<128x256xbf16>, vector<256x128xbf16>, vector<128x128xf32> -> vector<128x128xf32>
    %10 = arith.addf %7, %9 : vector<128x128xf32>
    %c0_5 = arith.constant 0 : index
    %c0_6 = arith.constant 0 : index
    %11 = vector.load %arg6[%c0_5, %c0_6] : memref<128x128xf32, #tpu.memory_space<vmem>>, vector<128x128xf32>
    tpu.vector_store %arg6[%c0_5, %c0_6], %10 {strides = array<i32>} : memref<128x128xf32, #tpu.memory_space<vmem>>, vector<128x128xf32>,
    %c0_i32_7 = arith.constant 0 : i32
    %12 = arith.cmpi eq, %arg1, %c0_i32_7 : i32
    %13 = arith.extui %12 : i1 to i32
    %c0_i32_8 = arith.constant 0 : i32
    %14 = arith.cmpi ne, %13, %c0_i32_8 : i32
    scf.if %14 {
      %c0_9 = arith.constant 0 : index
      %c0_10 = arith.constant 0 : index
      %15 = vector.load %arg6[%c0_9, %c0_10] : memref<128x128xf32, #tpu.memory_space<vmem>>, vector<128x128xf32>
      %c0_11 = arith.constant 0 : index
      %c0_12 = arith.constant 0 : index
      %16 = vector.load %arg4[%c0_11, %c0_12] : memref<1x128xf32, #tpu.memory_space<vmem>>, vector<1x128xf32>
      %17 = vector.broadcast %16 : vector<1x128xf32> to vector<128x128xf32>
      %18 = arith.addf %15, %17 : vector<128x128xf32>
      %c0_13 = arith.constant 0 : index
      %c0_14 = arith.constant 0 : index
      %19 = vector.load %arg5[%c0_13, %c0_14] : memref<128x128xf32, #tpu.memory_space<vmem>>, vector<128x128xf32>
      tpu.vector_store %arg5[%c0_13, %c0_14], %18 {strides = array<i32>} : memref<128x128xf32, #tpu.memory_space<vmem>>, vector<128x128xf32>,
    } else {
    }
    return
  }
  func.func @transform_0(%arg0: i32, %arg1: i32) -> (i32, i32) {
    %c0_i32 = arith.constant 0 : i32
    return %arg0, %arg1 : i32, i32
  }
  func.func @transform_1(%arg0: i32, %arg1: i32) -> (i32, i32) {
    %c0_i32 = arith.constant 0 : i32
    %c0_i32_0 = arith.constant 0 : i32
    %c0_i32_1 = arith.constant 0 : i32
    return %c0_i32, %c0_i32_0 : i32, i32
  }
  func.func @transform_2(%arg0: i32, %arg1: i32) -> (i32, i32) {
    %c0_i32 = arith.constant 0 : i32
    %c0_i32_0 = arith.constant 0 : i32
    %c0_i32_1 = arith.constant 0 : i32
    return %c0_i32, %c0_i32_0 : i32, i32
  }
  func.func @transform_3(%arg0: i32, %arg1: i32) -> (i32, i32) {
    %c0_i32 = arith.constant 0 : i32
    %c0_i32_0 = arith.constant 0 : i32
    return %arg0, %c0_i32 : i32, i32
  }
}

module attributes {stable_mosaic.version = 11 : i64} {
  func.func @_project_kernel(%arg0: i32, %arg1: memref<256x128xbf16, #tpu.memory_space<vmem>>, %arg2: memref<128x128xbf16, #tpu.memory_space<vmem>>, %arg3: memref<256x128xbf16, #tpu.memory_space<vmem>>) attributes {dimension_semantics = [#tpu.dimension_semantics<parallel>], iteration_bounds = array<i64: 1>, scalar_prefetch = 0 : i64, scratch_operands = 0 : i64, tpu.core_type = #tpu.core_type<tc>, window_params = [{transform_indices = @transform_0, window_bounds = array<i64: 256, 128>}, {pipeline_mode = #tpu.pipeline_mode<synchronous>, transform_indices = @transform_1, window_bounds = array<i64: 128, 128>}, {transform_indices = @transform_2, window_bounds = array<i64: 256, 128>}]} {
    %c0 = arith.constant 0 : index
    %c0_0 = arith.constant 0 : index
    %0 = vector.load %arg1[%c0, %c0_0] : memref<256x128xbf16, #tpu.memory_space<vmem>>, vector<256x128xbf16>
    %c0_1 = arith.constant 0 : index
    %c0_2 = arith.constant 0 : index
    %1 = vector.load %arg2[%c0_1, %c0_2] : memref<128x128xbf16, #tpu.memory_space<vmem>>, vector<128x128xbf16>
    %cst = arith.constant dense<0.000000e+00> : vector<256x128xf32>
    %2 = tpu.matmul %0, %1, %cst {dimension_numbers = #tpu.dot_dimension_numbers<[1], [0], [0], [1], [0, 0, 1, 1], [], []>} : vector<256x128xbf16>, vector<128x128xbf16>, vector<256x128xf32> -> vector<256x128xf32>
    %3 = arith.truncf %2 : vector<256x128xf32> to vector<256x128xbf16>
    %c0_3 = arith.constant 0 : index
    %c0_4 = arith.constant 0 : index
    %4 = vector.load %arg3[%c0_3, %c0_4] : memref<256x128xbf16, #tpu.memory_space<vmem>>, vector<256x128xbf16>
    tpu.vector_store %arg3[%c0_3, %c0_4], %3 {strides = array<i32>} : memref<256x128xbf16, #tpu.memory_space<vmem>>, vector<256x128xbf16>,
    return
  }
  func.func @transform_0(%arg0: i32) -> (i32, i32) {
    %c0_i32 = arith.constant 0 : i32
    %c0_i32_0 = arith.constant 0 : i32
    return %arg0, %c0_i32 : i32, i32
  }
  func.func @transform_1(%arg0: i32) -> (i32, i32) {
    %c0_i32 = arith.constant 0 : i32
    %c0_i32_0 = arith.constant 0 : i32
    %c0_i32_1 = arith.constant 0 : i32
    return %c0_i32, %c0_i32_0 : i32, i32
  }
  func.func @transform_2(%arg0: i32) -> (i32, i32) {
    %c0_i32 = arith.constant 0 : i32
    %c0_i32_0 = arith.constant 0 : i32
    return %arg0, %c0_i32 : i32, i32
  }
}

module attributes {stable_mosaic.version = 11 : i64} {
  func.func @_aggregate_kernel(%arg0: i32, %arg1: i32, %arg2: memref<128x256xbf16, #tpu.memory_space<vmem>>, %arg3: memref<256x128xbf16, #tpu.memory_space<vmem>>, %arg4: memref<1x128xf32, #tpu.memory_space<vmem>>, %arg5: memref<128x128xbf16, #tpu.memory_space<vmem>>, %arg6: memref<128x128xbf16, #tpu.memory_space<vmem>>, %arg7: memref<128x128xf32, #tpu.memory_space<vmem>>) attributes {dimension_semantics = [#tpu.dimension_semantics<parallel>, #tpu.dimension_semantics<arbitrary>], iteration_bounds = array<i64: 2, 1>, scalar_prefetch = 0 : i64, scratch_operands = 1 : i64, tpu.core_type = #tpu.core_type<tc>, window_params = [{transform_indices = @transform_0, window_bounds = array<i64: 128, 256>}, {pipeline_mode = #tpu.pipeline_mode<synchronous>, transform_indices = @transform_1, window_bounds = array<i64: 256, 128>}, {pipeline_mode = #tpu.pipeline_mode<synchronous>, transform_indices = @transform_2, window_bounds = array<i64: 1, 128>}, {pipeline_mode = #tpu.pipeline_mode<synchronous>, transform_indices = @transform_3, window_bounds = array<i64: 128, 128>}, {transform_indices = @transform_4, window_bounds = array<i64: 128, 128>}]} {
    %c0_i32 = arith.constant 0 : i32
    %0 = arith.cmpi eq, %arg1, %c0_i32 : i32
    %1 = arith.extui %0 : i1 to i32
    %c0_i32_0 = arith.constant 0 : i32
    %2 = arith.cmpi ne, %1, %c0_i32_0 : i32
    scf.if %2 {
      %cst_9 = arith.constant 0.000000e+00 : f32
      %15 = vector.broadcast %cst_9 : f32 to vector<128x128xf32>
      %c0_10 = arith.constant 0 : index
      %c0_11 = arith.constant 0 : index
      %16 = vector.load %arg7[%c0_10, %c0_11] : memref<128x128xf32, #tpu.memory_space<vmem>>, vector<128x128xf32>
      tpu.vector_store %arg7[%c0_10, %c0_11], %15 {strides = array<i32>} : memref<128x128xf32, #tpu.memory_space<vmem>>, vector<128x128xf32>,
    } else {
    }
    %c256_i32 = arith.constant 256 : i32
    %3 = arith.muli %arg1, %c256_i32 : i32
    %4 = tpu.assume_multiple %3, 256 : i32
    %5 = arith.index_cast %4 : i32 to index
    %c0 = arith.constant 0 : index
    %6 = vector.load %arg3[%5, %c0] : memref<256x128xbf16, #tpu.memory_space<vmem>>, vector<256x128xbf16>
    %c0_1 = arith.constant 0 : index
    %c0_2 = arith.constant 0 : index
    %7 = vector.load %arg7[%c0_1, %c0_2] : memref<128x128xf32, #tpu.memory_space<vmem>>, vector<128x128xf32>
    %c0_3 = arith.constant 0 : index
    %c0_4 = arith.constant 0 : index
    %8 = vector.load %arg2[%c0_3, %c0_4] : memref<128x256xbf16, #tpu.memory_space<vmem>>, vector<128x256xbf16>
    %cst = arith.constant dense<0.000000e+00> : vector<128x128xf32>
    %9 = tpu.matmul %8, %6, %cst {dimension_numbers = #tpu.dot_dimension_numbers<[1], [0], [0], [1], [0, 0, 1, 1], [], []>} : vector<128x256xbf16>, vector<256x128xbf16>, vector<128x128xf32> -> vector<128x128xf32>
    %10 = arith.addf %7, %9 : vector<128x128xf32>
    %c0_5 = arith.constant 0 : index
    %c0_6 = arith.constant 0 : index
    %11 = vector.load %arg7[%c0_5, %c0_6] : memref<128x128xf32, #tpu.memory_space<vmem>>, vector<128x128xf32>
    tpu.vector_store %arg7[%c0_5, %c0_6], %10 {strides = array<i32>} : memref<128x128xf32, #tpu.memory_space<vmem>>, vector<128x128xf32>,
    %c0_i32_7 = arith.constant 0 : i32
    %12 = arith.cmpi eq, %arg1, %c0_i32_7 : i32
    %13 = arith.extui %12 : i1 to i32
    %c0_i32_8 = arith.constant 0 : i32
    %14 = arith.cmpi ne, %13, %c0_i32_8 : i32
    scf.if %14 {
      %c0_9 = arith.constant 0 : index
      %c0_10 = arith.constant 0 : index
      %15 = vector.load %arg7[%c0_9, %c0_10] : memref<128x128xf32, #tpu.memory_space<vmem>>, vector<128x128xf32>
      %c0_11 = arith.constant 0 : index
      %c0_12 = arith.constant 0 : index
      %16 = vector.load %arg4[%c0_11, %c0_12] : memref<1x128xf32, #tpu.memory_space<vmem>>, vector<1x128xf32>
      %17 = vector.broadcast %16 : vector<1x128xf32> to vector<128x128xf32>
      %18 = arith.addf %15, %17 : vector<128x128xf32>
      %cst_13 = arith.constant 0.000000e+00 : f32
      %19 = vector.broadcast %cst_13 : f32 to vector<128x128xf32>
      %20 = arith.maximumf %18, %19 : vector<128x128xf32>
      %21 = arith.truncf %20 : vector<128x128xf32> to vector<128x128xbf16>
      %c0_14 = arith.constant 0 : index
      %c0_15 = arith.constant 0 : index
      %22 = vector.load %arg5[%c0_14, %c0_15] : memref<128x128xbf16, #tpu.memory_space<vmem>>, vector<128x128xbf16>
      %cst_16 = arith.constant dense<0.000000e+00> : vector<128x128xf32>
      %23 = tpu.matmul %21, %22, %cst_16 {dimension_numbers = #tpu.dot_dimension_numbers<[1], [0], [0], [1], [0, 0, 1, 1], [], []>} : vector<128x128xbf16>, vector<128x128xbf16>, vector<128x128xf32> -> vector<128x128xf32>
      %24 = arith.truncf %23 : vector<128x128xf32> to vector<128x128xbf16>
      %c0_17 = arith.constant 0 : index
      %c0_18 = arith.constant 0 : index
      %25 = vector.load %arg6[%c0_17, %c0_18] : memref<128x128xbf16, #tpu.memory_space<vmem>>, vector<128x128xbf16>
      tpu.vector_store %arg6[%c0_17, %c0_18], %24 {strides = array<i32>} : memref<128x128xbf16, #tpu.memory_space<vmem>>, vector<128x128xbf16>,
    } else {
    }
    return
  }
  func.func @transform_0(%arg0: i32, %arg1: i32) -> (i32, i32) {
    %c0_i32 = arith.constant 0 : i32
    return %arg0, %arg1 : i32, i32
  }
  func.func @transform_1(%arg0: i32, %arg1: i32) -> (i32, i32) {
    %c0_i32 = arith.constant 0 : i32
    %c0_i32_0 = arith.constant 0 : i32
    %c0_i32_1 = arith.constant 0 : i32
    return %c0_i32, %c0_i32_0 : i32, i32
  }
  func.func @transform_2(%arg0: i32, %arg1: i32) -> (i32, i32) {
    %c0_i32 = arith.constant 0 : i32
    %c0_i32_0 = arith.constant 0 : i32
    %c0_i32_1 = arith.constant 0 : i32
    return %c0_i32, %c0_i32_0 : i32, i32
  }
  func.func @transform_3(%arg0: i32, %arg1: i32) -> (i32, i32) {
    %c0_i32 = arith.constant 0 : i32
    %c0_i32_0 = arith.constant 0 : i32
    %c0_i32_1 = arith.constant 0 : i32
    return %c0_i32, %c0_i32_0 : i32, i32
  }
  func.func @transform_4(%arg0: i32, %arg1: i32) -> (i32, i32) {
    %c0_i32 = arith.constant 0 : i32
    %c0_i32_0 = arith.constant 0 : i32
    return %arg0, %c0_i32 : i32, i32
  }
}

</mosaic_0001>

<bundles_post_ra>
// kernel: gcn_forward.7
= control target key start
LH: loop header
LB: loop body
LE: loop exit
PB: predicated region body
PF: predicated region fallthrough
CT: control target
= control target key end

     0   :  { %s965_s12 = smov 0   ;;  %s967_s13 = smov 0   ;;  %s1110_s0 = inlined_call_operand.vmem [shape: bf16[256,256], index: 0, kind: input, shape index: {}]   ;;  %s1111_s1 = inlined_call_operand.vmem [shape: bf16[256,128], index: 1, kind: input, shape index: {}]   ;;  %s1112_s2 = inlined_call_operand.vmem [shape: f32[1,128], index: 2, kind: input, shape index: {}]   ;;  %s1113_s3 = inlined_call_operand.vmem [shape: f32[256,128], index: 3, kind: output, shape index: {}]  }
   0x1   :  { %s969_s14 = smov 0  }
   0x2 LB: > { %s25_s15 = sadd.s32 1, %s939_s13  ;;  %p735_p0 = scmp.ge.s32.totalorder %s943_s14, 1  ;;  %s943_s14 = sphi %s969_s14, %s13_s14   ;;  %s939_s13 = sphi %s967_s13, %s1115_s13   ;;  %s935_s12 = sphi %s965_s12, %s1114_s12  }
   0x3   : > { %p27_p1 = scmp.ge.s32.totalorder %s25_s15, 2  ;;  %p158_p2 = scmp.lt.s32.totalorder %s943_s14, 3 }
   0x5   : > { %s1117_s15 = smov (%p27_p1, %s25_s15), 0  ;;  %p159_p3 = pnand %p735_p0, %p158_p2 }
   0x6   : > { %v881_v0 = vld [vmem:[%s1111_s1 + $0x40] sm:$0xff] (!%p159_p3)   ;;  %s736_s18 = sshll.u32 (!%p159_p3), %s935_s12, 4  ;;  %v883_v2 = vld [vmem:[%s1111_s1 + $0x48] sm:$0xff] (!%p159_p3)   ;;  %v885_v4 = vld [vmem:[%s1111_s1 + $0x50] sm:$0xff] (!%p159_p3)  }
   0x7   : > { %162 = sbr.rel (%p159_p3) target bundleno = 283 (0x11b), region = 32  ;;  %v882_v1 = vld [vmem:[%s1111_s1] sm:$0xff] (!%p159_p3)   ;;  %777 = vmatprep.subr.bf16.mxu0 (!%p159_p3), %v881_v0  ;;  %841 = vmatprep.subr.bf16.mxu1 (!%p159_p3), %v881_v0  ;;  %v884_v3 = vld [vmem:[%s1111_s1 + $0x8] sm:$0xff] (!%p159_p3)   ;;  %p189_p4 = scmp.lt.s32.totalorder (!%p159_p3), %s736_s18, 31  ;;  %v886_v5 = vld [vmem:[%s1111_s1 + $0x10] sm:$0xff] (!%p159_p3)  }
   0x8   : > { %778 = vmatpush3.bf16.msra.mxu0 (!%p159_p3), %v882_v1  ;;  %849 = vmatpush3.bf16.msra.mxu1 (!%p159_p3), %v882_v1  ;;  %v887_v6 = vld [vmem:[%s1111_s1 + $0x58] sm:$0xff] (!%p159_p3)   ;;  %v889_v8 = vld [vmem:[%s1111_s1 + $0x60] sm:$0xff] (!%p159_p3)   ;;  %v891_v10 = vld [vmem:[%s1111_s1 + $0x68] sm:$0xff] (!%p159_p3)  }
   0x9   : > { %779 = vmatprep.subr.bf16.mxu0 (!%p159_p3), %v883_v2  ;;  %842 = vmatprep.subr.bf16.mxu1 (!%p159_p3), %v883_v2  ;;  %v888_v7 = vld [vmem:[%s1111_s1 + $0x18] sm:$0xff] (!%p159_p3)   ;;  %v890_v9 = vld [vmem:[%s1111_s1 + $0x20] sm:$0xff] (!%p159_p3)   ;;  %v892_v13 = vld [vmem:[%s1111_s1 + $0x28] sm:$0xff] (!%p159_p3)  }
   0xa   : > { %v893_v14 = vld [vmem:[%s1111_s1 + $0x70] sm:$0xff] (!%p159_p3)   ;;  %v895_v16 = vld [vmem:[%s1111_s1 + $0x78] sm:$0xff] (!%p159_p3)   ;;  %v1060_v35 = vld [vmem:[%s1112_s2] ss:$0 sm:$0xff] (!%p159_p3) }
   0xb   : > { %v894_v15 = vld [vmem:[%s1111_s1 + $0x30] sm:$0xff] (!%p159_p3)   ;;  %v896_v17 = vld [vmem:[%s1111_s1 + $0x38] sm:$0xff] (!%p159_p3)  }
   0xc   : > { %780 = vmatpush3.bf16.msra.mxu0 (!%p159_p3), %v884_v3  ;;  %850 = vmatpush3.bf16.msra.mxu1 (!%p159_p3), %v884_v3 }
   0xd   : > { %781 = vmatprep.subr.bf16.mxu0 (!%p159_p3), %v885_v4  ;;  %843 = vmatprep.subr.bf16.mxu1 (!%p159_p3), %v885_v4 }
   0xe   : > { %s1119_s18 = smov (!%p189_p4, %s736_s18), 31 }
   0xf   : > { %s776_s6 = sshll.u32 %s1119_s18, 3 }
  0x10   : > { %782 = vmatpush3.bf16.msra.mxu0 %v886_v5  ;;  %851 = vmatpush3.bf16.msra.mxu1 %v886_v5  ;;  %s1018_s11 = scalar_lea.vmem %s1110_s0, %s776_s6  ;;  %s1067_s8 = scalar_lea.vmem %s1113_s3, %s776_s6 }
  0x11   : > { %783 = vmatprep.subr.bf16.mxu0 %v887_v6  ;;  %844 = vmatprep.subr.bf16.mxu1 %v887_v6  ;;  %v899_v11 = vld [vmem:[%s1018_s11 + $0x4] ss:$8 sps:$4 sm:$0xff]   ;;  %v897_v18 = vld [vmem:[%s1018_s11] ss:$8 sps:$4 sm:$0xff]   ;;  %v903_v20 = vld [vmem:[%s1018_s11 + $0x14] ss:$8 sps:$4 sm:$0xff]  }
  0x12   : > { %v902_v12 = vld [vmem:[%s1018_s11 + $0x44] ss:$8 sps:$4 sm:$0xff]   ;;  %503 = vmatprep.mubr.bf16.mxu0 %v899_v11  ;;  %v900_v19 = vld [vmem:[%s1018_s11 + $0x40] ss:$8 sps:$4 sm:$0xff]   ;;  %v905_v21 = vld [vmem:[%s1018_s11 + $0x54] ss:$8 sps:$4 sm:$0xff]  }
  0x13   : > { %535 = vmatprep.mubr.bf16.mxu1 %v902_v12  ;;  %v907_v22 = vld [vmem:[%s1018_s11 + $0x10] ss:$8 sps:$4 sm:$0xff]   ;;  %v909_v24 = vld [vmem:[%s1018_s11 + $0x24] ss:$8 sps:$4 sm:$0xff]   ;;  %v913_v26 = vld [vmem:[%s1018_s11 + $0x20] ss:$8 sps:$4 sm:$0xff]  }
  0x14   : > { %784 = vmatpush3.bf16.msra.mxu0 %v888_v7  ;;  %852 = vmatpush3.bf16.msra.mxu1 %v888_v7  ;;  %v908_v23 = vld [vmem:[%s1018_s11 + $0x50] ss:$8 sps:$4 sm:$0xff]   ;;  %v911_v25 = vld [vmem:[%s1018_s11 + $0x64] ss:$8 sps:$4 sm:$0xff]   ;;  %v914_v27 = vld [vmem:[%s1018_s11 + $0x60] ss:$8 sps:$4 sm:$0xff]  }
  0x15   : > { %785 = vmatprep.subr.bf16.mxu0 %v889_v8  ;;  %845 = vmatprep.subr.bf16.mxu1 %v889_v8  ;;  %v915_v28 = vld [vmem:[%s1018_s11 + $0x34] ss:$8 sps:$4 sm:$0xff]   ;;  %v919_v30 = vld [vmem:[%s1018_s11 + $0x30] ss:$8 sps:$4 sm:$0xff]  }
  0x16   : > { %v917_v29 = vld [vmem:[%s1018_s11 + $0x74] ss:$8 sps:$4 sm:$0xff]   ;;  %v920_v31 = vld [vmem:[%s1018_s11 + $0x70] ss:$8 sps:$4 sm:$0xff]  }
  0x18   : > { %786 = vmatpush3.bf16.msra.mxu0 %v890_v9  ;;  %853 = vmatpush3.bf16.msra.mxu1 %v890_v9 }
  0x19   : > { %787 = vmatprep.subr.bf16.mxu0 %v891_v10  ;;  %846 = vmatprep.subr.bf16.mxu1 %v891_v10 }
  0x1c   : > { %788 = vmatpush3.bf16.msra.mxu0 %v892_v13  ;;  %854 = vmatpush3.bf16.msra.mxu1 %v892_v13 }
  0x1d   : > { %789 = vmatprep.subr.bf16.mxu0 %v893_v14  ;;  %847 = vmatprep.subr.bf16.mxu1 %v893_v14 }
  0x20   : > { %790 = vmatpush3.bf16.msra.mxu0 %v894_v15  ;;  %855 = vmatpush3.bf16.msra.mxu1 %v894_v15 }
  0x21   : > { %791 = vmatprep.subr.bf16.mxu0 %v895_v16  ;;  %848 = vmatprep.subr.bf16.mxu1 %v895_v16 }
  0x24   : > { %792 = vmatpush3.bf16.msra.mxu0 %v896_v17  ;;  %856 = vmatpush3.bf16.msra.mxu1 %v896_v17 }
  0x27   : > { %504 = vmatmul.mubr.bf16.vlgmr.msra.gmra.mrb[0].mxu0 %v897_v18  ;;  %536 = vmatmul.mubr.bf16.vlgmr.msra.gmra.mrb[0].mxu1 %v900_v19 }
  0x28   : > { %511 = vmatprep.mubr.bf16.mxu0 %v903_v20  ;;  %543 = vmatprep.mubr.bf16.mxu1 %v905_v21 }
  0x2f   : > { %512 = vmatmul.mubr.bf16.gmra.mrb[4].mxu0 %v907_v22  ;;  %544 = vmatmul.mubr.bf16.gmra.mrb[4].mxu1 %v908_v23 }
  0x30   : > { %519 = vmatprep.mubr.bf16.mxu0 %v909_v24  ;;  %551 = vmatprep.mubr.bf16.mxu1 %v911_v25 }
  0x37   : > { %520 = vmatmul.mubr.bf16.gmra.mrb[8].mxu0 %v913_v26  ;;  %552 = vmatmul.mubr.bf16.gmra.mrb[8].mxu1 %v914_v27 }
  0x38   : > { %527 = vmatprep.mubr.bf16.mxu0 %v915_v28  ;;  %559 = vmatprep.mubr.bf16.mxu1 %v917_v29 }
  0x3f   : > { %528 = vmatmul.mubr.bf16.gmra.mrb[12].mxu0 %v919_v30  ;;  %560 = vmatmul.mubr.bf16.gmra.mrb[12].mxu1 %v920_v31 }
  0xfa   : > { %v793_v32 = vpop.f32.mrb[0].mxu0  ;;  %v817_v33 = vpop.f32.mrb[0].mxu1 }
  0xfb   : > { %v794_v34 = vpop.f32.mrb[1].mxu0  ;;  %v818_v36 = vpop.f32.mrb[1].mxu1 }
  0xfc   : > { %v795_v37 = vadd.f32 %v794_v34, %v793_v32  ;;  %v819_v38 = vadd.f32 %v818_v36, %v817_v33  ;;  %v796_v39 = vpop.f32.mrb[2].mxu0  ;;  %v820_v40 = vpop.f32.mrb[2].mxu1 }
  0xfd   : > { %v797_v41 = vpop.f32.mrb[3].mxu0  ;;  %v821_v42 = vpop.f32.mrb[3].mxu1 }
  0xfe   : > { %v626_v43 = vadd.f32 %v795_v37, %v1060_v35  ;;  %v634_v44 = vadd.f32 %v819_v38, %v1060_v35  ;;  %v798_v45 = vadd.f32 %v797_v41, %v796_v39  ;;  %v822_v46 = vadd.f32 %v821_v42, %v820_v40 }
 0x100   : > { %642 = vst [vmem:[%s1067_s8] sm:$0xff] %v626_v43  ;;  %650 = vst [vmem:[%s1067_s8 + $0x40] sm:$0xff] %v634_v44  ;;  %v627_v47 = vadd.f32 %v798_v45, %v1060_v35  ;;  %v635_v48 = vadd.f32 %v822_v46, %v1060_v35 }
 0x102   : > { %643 = vst [vmem:[%s1067_s8 + $0x8] sm:$0xff] %v627_v47  ;;  %651 = vst [vmem:[%s1067_s8 + $0x48] sm:$0xff] %v635_v48  ;;  %v799_v49 = vpop.f32.mrb[4].mxu0  ;;  %v823_v50 = vpop.f32.mrb[4].mxu1 }
 0x103   : > { %v800_v51 = vpop.f32.mrb[5].mxu0  ;;  %v824_v52 = vpop.f32.mrb[5].mxu1 }
 0x104   : > { %v801_v53 = vadd.f32 %v800_v51, %v799_v49  ;;  %v825_v54 = vadd.f32 %v824_v52, %v823_v50  ;;  %v802_v55 = vpop.f32.mrb[6].mxu0  ;;  %v826_v56 = vpop.f32.mrb[6].mxu1 }
 0x105   : > { %v803_v57 = vpop.f32.mrb[7].mxu0  ;;  %v827_v58 = vpop.f32.mrb[7].mxu1 }
 0x106   : > { %v628_v59 = vadd.f32 %v801_v53, %v1060_v35  ;;  %v636_v60 = vadd.f32 %v825_v54, %v1060_v35  ;;  %v804_v61 = vadd.f32 %v803_v57, %v802_v55  ;;  %v828_v62 = vadd.f32 %v827_v58, %v826_v56 }
 0x108   : > { %644 = vst [vmem:[%s1067_s8 + $0x10] sm:$0xff] %v628_v59  ;;  %652 = vst [vmem:[%s1067_s8 + $0x50] sm:$0xff] %v636_v60  ;;  %v629_v63 = vadd.f32 %v804_v61, %v1060_v35  ;;  %v637_v0 = vadd.f32 %v828_v62, %v1060_v35 }
 0x10a   : > { %645 = vst [vmem:[%s1067_s8 + $0x18] sm:$0xff] %v629_v63  ;;  %653 = vst [vmem:[%s1067_s8 + $0x58] sm:$0xff] %v637_v0  ;;  %v805_v1 = vpop.f32.mrb[8].mxu0  ;;  %v829_v2 = vpop.f32.mrb[8].mxu1 }
 0x10b   : > { %v806_v3 = vpop.f32.mrb[9].mxu0  ;;  %v830_v4 = vpop.f32.mrb[9].mxu1 }
 0x10c   : > { %v807_v5 = vadd.f32 %v806_v3, %v805_v1  ;;  %v831_v6 = vadd.f32 %v830_v4, %v829_v2  ;;  %v808_v7 = vpop.f32.mrb[10].mxu0  ;;  %v832_v8 = vpop.f32.mrb[10].mxu1 }
 0x10d   : > { %v809_v9 = vpop.f32.mrb[11].mxu0  ;;  %v833_v10 = vpop.f32.mrb[11].mxu1 }
 0x10e   : > { %v630_v11 = vadd.f32 %v807_v5, %v1060_v35  ;;  %v638_v12 = vadd.f32 %v831_v6, %v1060_v35  ;;  %v810_v13 = vadd.f32 %v809_v9, %v808_v7  ;;  %v834_v14 = vadd.f32 %v833_v10, %v832_v8 }
 0x110   : > { %646 = vst [vmem:[%s1067_s8 + $0x20] sm:$0xff] %v630_v11  ;;  %654 = vst [vmem:[%s1067_s8 + $0x60] sm:$0xff] %v638_v12  ;;  %v631_v15 = vadd.f32 %v810_v13, %v1060_v35  ;;  %v639_v16 = vadd.f32 %v834_v14, %v1060_v35 }
 0x112   : > { %647 = vst [vmem:[%s1067_s8 + $0x28] sm:$0xff] %v631_v15  ;;  %655 = vst [vmem:[%s1067_s8 + $0x68] sm:$0xff] %v639_v16  ;;  %v811_v17 = vpop.f32.mrb[12].mxu0  ;;  %v835_v18 = vpop.f32.mrb[12].mxu1 }
 0x113   : > { %v812_v19 = vpop.f32.mrb[13].mxu0  ;;  %v836_v20 = vpop.f32.mrb[13].mxu1 }
 0x114   : > { %v813_v21 = vadd.f32 %v812_v19, %v811_v17  ;;  %v837_v22 = vadd.f32 %v836_v20, %v835_v18  ;;  %v814_v23 = vpop.f32.mrb[14].mxu0  ;;  %v838_v24 = vpop.f32.mrb[14].mxu1 }
 0x115   : > { %v815_v25 = vpop.f32.mrb[15].mxu0  ;;  %v839_v26 = vpop.f32.mrb[15].mxu1 }
 0x116   : > { %v632_v27 = vadd.f32 %v813_v21, %v1060_v35  ;;  %v640_v28 = vadd.f32 %v837_v22, %v1060_v35  ;;  %v816_v29 = vadd.f32 %v815_v25, %v814_v23  ;;  %v840_v30 = vadd.f32 %v839_v26, %v838_v24 }
 0x118   : > { %648 = vst [vmem:[%s1067_s8 + $0x30] sm:$0xff] %v632_v27  ;;  %656 = vst [vmem:[%s1067_s8 + $0x70] sm:$0xff] %v640_v28  ;;  %v633_v31 = vadd.f32 %v816_v29, %v1060_v35  ;;  %v641_v32 = vadd.f32 %v840_v30, %v1060_v35 }
 0x11a   : > { %649 = vst [vmem:[%s1067_s8 + $0x38] sm:$0xff] %v633_v31  ;;  %657 = vst [vmem:[%s1067_s8 + $0x78] sm:$0xff] %v641_v32 }
 0x11b PF: > { %s13_s14 = sadd.s32 1, %s943_s14   ;;  %s1114_s12 = smov %s939_s13 }
 0x11c   : > { %p10_p5 = scmp.ge.s32.totalorder %s13_s14, 4   ;;  %s1115_s13 = smov %s1117_s15 }
 0x11e   :  { %12 = sbr.rel (!%p10_p5) target bundleno = 2 (0x2), region = 71 }

// kernel: gcn_forward.4
= control target key start
LH: loop header
LB: loop body
LE: loop exit
PB: predicated region body
PF: predicated region fallthrough
CT: control target
= control target key end

     0   :  { %s959_s1 = inlined_call_operand.vmem [shape: bf16[128,128], index: 1, kind: input, shape index: {}]   ;;  %s960_s0 = inlined_call_operand.vmem [shape: bf16[256,128], index: 0, kind: input, shape index: {}]   ;;  %s961_s2 = inlined_call_operand.vmem [shape: bf16[256,128], index: 2, kind: output, shape index: {}]  }
   0x1   :  { %v800_v0 = vld [vmem:[%s959_s1] sm:$0xff]   ;;  %v801_v1 = vld [vmem:[%s959_s1 + $0x8] sm:$0xff]   ;;  %v802_v2 = vld [vmem:[%s959_s1 + $0x10] sm:$0xff]  }
   0x2   :  { %736 = vmatprep.subr.bf16.mxu0 %v800_v0  ;;  %784 = vmatprep.subr.bf16.mxu1 %v800_v0  ;;  %v803_v3 = vld [vmem:[%s959_s1 + $0x18] sm:$0xff]   ;;  %v808_v4 = vld [vmem:[%s960_s0] sm:$0xff]   ;;  %v805_v7 = vld [vmem:[%s959_s1 + $0x28] sm:$0xff]  }
   0x3   :  { %737 = vmatpush3.bf16.msra.mxu0 %v800_v0  ;;  %792 = vmatpush3.bf16.msra.mxu1 %v800_v0  ;;  %v809_v5 = vld [vmem:[%s960_s0 + $0x40] sm:$0xff]   ;;  %v806_v8 = vld [vmem:[%s959_s1 + $0x30] sm:$0xff]   ;;  %v807_v9 = vld [vmem:[%s959_s1 + $0x38] sm:$0xff]  }
   0x4   :  { %738 = vmatprep.subr.bf16.mxu0 %v801_v1  ;;  %785 = vmatprep.subr.bf16.mxu1 %v801_v1  ;;  %v804_v6 = vld [vmem:[%s959_s1 + $0x20] sm:$0xff]   ;;  %v810_v10 = vld [vmem:[%s960_s0 + $0x8] sm:$0xff]   ;;  %v812_v12 = vld [vmem:[%s960_s0 + $0x10] sm:$0xff]  }
   0x5   :  { %752 = vmatprep.mubr.bf16.mxu0 %v808_v4  ;;  %768 = vmatprep.mubr.bf16.mxu1 %v809_v5  ;;  %v811_v11 = vld [vmem:[%s960_s0 + $0x48] sm:$0xff]   ;;  %v813_v13 = vld [vmem:[%s960_s0 + $0x50] sm:$0xff]   ;;  %v814_v14 = vld [vmem:[%s960_s0 + $0x18] sm:$0xff]  }
   0x6   :  { %v815_v15 = vld [vmem:[%s960_s0 + $0x58] sm:$0xff]   ;;  %v816_v16 = vld [vmem:[%s960_s0 + $0x20] sm:$0xff]   ;;  %v818_v18 = vld [vmem:[%s960_s0 + $0x28] sm:$0xff]  }
   0x7   :  { %739 = vmatpush3.bf16.msra.mxu0 %v801_v1  ;;  %793 = vmatpush3.bf16.msra.mxu1 %v801_v1  ;;  %v817_v17 = vld [vmem:[%s960_s0 + $0x60] sm:$0xff]   ;;  %v819_v19 = vld [vmem:[%s960_s0 + $0x68] sm:$0xff]   ;;  %v820_v20 = vld [vmem:[%s960_s0 + $0x30] sm:$0xff]  }
   0x8   :  { %740 = vmatprep.subr.bf16.mxu0 %v802_v2  ;;  %786 = vmatprep.subr.bf16.mxu1 %v802_v2  ;;  %v821_v21 = vld [vmem:[%s960_s0 + $0x70] sm:$0xff]   ;;  %v822_v22 = vld [vmem:[%s960_s0 + $0x38] sm:$0xff]  }
   0x9   :  { %v823_v23 = vld [vmem:[%s960_s0 + $0x78] sm:$0xff]  }
   0xb   :  { %741 = vmatpush3.bf16.msra.mxu0 %v802_v2  ;;  %794 = vmatpush3.bf16.msra.mxu1 %v802_v2 }
   0xc   :  { %742 = vmatprep.subr.bf16.mxu0 %v803_v3  ;;  %787 = vmatprep.subr.bf16.mxu1 %v803_v3 }
   0xf   :  { %743 = vmatpush3.bf16.msra.mxu0 %v803_v3  ;;  %795 = vmatpush3.bf16.msra.mxu1 %v803_v3 }
  0x10   :  { %744 = vmatprep.subr.bf16.mxu0 %v804_v6  ;;  %788 = vmatprep.subr.bf16.mxu1 %v804_v6 }
  0x13   :  { %745 = vmatpush3.bf16.msra.mxu0 %v804_v6  ;;  %796 = vmatpush3.bf16.msra.mxu1 %v804_v6 }
  0x14   :  { %746 = vmatprep.subr.bf16.mxu0 %v805_v7  ;;  %789 = vmatprep.subr.bf16.mxu1 %v805_v7 }
  0x17   :  { %747 = vmatpush3.bf16.msra.mxu0 %v805_v7  ;;  %797 = vmatpush3.bf16.msra.mxu1 %v805_v7 }
  0x18   :  { %748 = vmatprep.subr.bf16.mxu0 %v806_v8  ;;  %790 = vmatprep.subr.bf16.mxu1 %v806_v8 }
  0x1b   :  { %749 = vmatpush3.bf16.msra.mxu0 %v806_v8  ;;  %798 = vmatpush3.bf16.msra.mxu1 %v806_v8 }
  0x1c   :  { %750 = vmatprep.subr.bf16.mxu0 %v807_v9  ;;  %791 = vmatprep.subr.bf16.mxu1 %v807_v9 }
  0x1f   :  { %751 = vmatpush3.bf16.msra.mxu0 %v807_v9  ;;  %799 = vmatpush3.bf16.msra.mxu1 %v807_v9 }
  0x22   :  { %753 = vmatmul.mubr.bf16.vlgmr.msra.gmra.mrb[0].mxu0 %v810_v10  ;;  %769 = vmatmul.mubr.bf16.vlgmr.msra.gmra.mrb[0].mxu1 %v811_v11 }
  0x23   :  { %756 = vmatprep.mubr.bf16.mxu0 %v812_v12  ;;  %772 = vmatprep.mubr.bf16.mxu1 %v813_v13 }
  0x2a   :  { %757 = vmatmul.mubr.bf16.gmra.mrb[4].mxu0 %v814_v14  ;;  %773 = vmatmul.mubr.bf16.gmra.mrb[4].mxu1 %v815_v15 }
  0x2b   :  { %760 = vmatprep.mubr.bf16.mxu0 %v816_v16  ;;  %776 = vmatprep.mubr.bf16.mxu1 %v817_v17 }
  0x32   :  { %761 = vmatmul.mubr.bf16.gmra.mrb[8].mxu0 %v818_v18  ;;  %777 = vmatmul.mubr.bf16.gmra.mrb[8].mxu1 %v819_v19 }
  0x33   :  { %764 = vmatprep.mubr.bf16.mxu0 %v820_v20  ;;  %780 = vmatprep.mubr.bf16.mxu1 %v821_v21 }
  0x3a   :  { %765 = vmatmul.mubr.bf16.gmra.mrb[12].mxu0 %v822_v22  ;;  %781 = vmatmul.mubr.bf16.gmra.mrb[12].mxu1 %v823_v23 }
  0xf5   :  { %v754_v24 = vpop.f32.mrb[0].mxu0  ;;  %v770_v25 = vpop.f32.mrb[0].mxu1 }
  0xf6   :  { %v238_v26 = vpop.f32.mrb[1].mxu0  ;;  %v302_v27 = vpop.f32.mrb[1].mxu1 }
  0xf7   :  { %v755_v28 = vpop.f32.mrb[2].mxu0  ;;  %v771_v29 = vpop.f32.mrb[2].mxu1 }
  0xf8   :  { %v625_v30 = vpack.c.bf16 %v755_v28, %v754_v24  ;;  %v665_v31 = vpack.c.bf16 %v771_v29, %v770_v25  ;;  %v241_v32 = vpop.f32.mrb[3].mxu0  ;;  %v305_v33 = vpop.f32.mrb[3].mxu1 }
  0xf9   :  { %v620_v34 = vpack.c.bf16 %v241_v32, %v238_v26  ;;  %v660_v35 = vpack.c.bf16 %v305_v33, %v302_v27 }
  0xfa   :  { %697 = vst [vmem:[%s961_s2 + $0x8] sm:$0xff] %v625_v30   ;;  %705 = vst [vmem:[%s961_s2 + $0x48] sm:$0xff] %v665_v31  }
  0xfb   :  { %621 = vst [vmem:[%s961_s2] sm:$0xff] %v620_v34   ;;  %704 = vst [vmem:[%s961_s2 + $0x40] sm:$0xff] %v660_v35  }
  0xfd   :  { %v758_v36 = vpop.f32.mrb[4].mxu0  ;;  %v774_v37 = vpop.f32.mrb[4].mxu1 }
  0xfe   :  { %v254_v38 = vpop.f32.mrb[5].mxu0  ;;  %v318_v39 = vpop.f32.mrb[5].mxu1 }
  0xff   :  { %v759_v40 = vpop.f32.mrb[6].mxu0  ;;  %v775_v41 = vpop.f32.mrb[6].mxu1 }
 0x100   :  { %v635_v42 = vpack.c.bf16 %v759_v40, %v758_v36  ;;  %v675_v43 = vpack.c.bf16 %v775_v41, %v774_v37  ;;  %v257_v44 = vpop.f32.mrb[7].mxu0  ;;  %v321_v45 = vpop.f32.mrb[7].mxu1 }
 0x101   :  { %v630_v46 = vpack.c.bf16 %v257_v44, %v254_v38  ;;  %v670_v47 = vpack.c.bf16 %v321_v45, %v318_v39 }
 0x102   :  { %699 = vst [vmem:[%s961_s2 + $0x18] sm:$0xff] %v635_v42   ;;  %707 = vst [vmem:[%s961_s2 + $0x58] sm:$0xff] %v675_v43  }
 0x103   :  { %698 = vst [vmem:[%s961_s2 + $0x10] sm:$0xff] %v630_v46   ;;  %706 = vst [vmem:[%s961_s2 + $0x50] sm:$0xff] %v670_v47  }
 0x105   :  { %v762_v48 = vpop.f32.mrb[8].mxu0  ;;  %v778_v49 = vpop.f32.mrb[8].mxu1 }
 0x106   :  { %v270_v50 = vpop.f32.mrb[9].mxu0  ;;  %v334_v51 = vpop.f32.mrb[9].mxu1 }
 0x107   :  { %v763_v52 = vpop.f32.mrb[10].mxu0  ;;  %v779_v53 = vpop.f32.mrb[10].mxu1 }
 0x108   :  { %v645_v54 = vpack.c.bf16 %v763_v52, %v762_v48  ;;  %v685_v55 = vpack.c.bf16 %v779_v53, %v778_v49  ;;  %v273_v56 = vpop.f32.mrb[11].mxu0  ;;  %v337_v57 = vpop.f32.mrb[11].mxu1 }
 0x109   :  { %v640_v58 = vpack.c.bf16 %v273_v56, %v270_v50  ;;  %v680_v59 = vpack.c.bf16 %v337_v57, %v334_v51 }
 0x10a   :  { %701 = vst [vmem:[%s961_s2 + $0x28] sm:$0xff] %v645_v54   ;;  %709 = vst [vmem:[%s961_s2 + $0x68] sm:$0xff] %v685_v55  }
 0x10b   :  { %700 = vst [vmem:[%s961_s2 + $0x20] sm:$0xff] %v640_v58   ;;  %708 = vst [vmem:[%s961_s2 + $0x60] sm:$0xff] %v680_v59  }
 0x10d   :  { %v766_v60 = vpop.f32.mrb[12].mxu0  ;;  %v782_v61 = vpop.f32.mrb[12].mxu1 }
 0x10e   :  { %v286_v62 = vpop.f32.mrb[13].mxu0  ;;  %v350_v63 = vpop.f32.mrb[13].mxu1 }
 0x10f   :  { %v767_v0 = vpop.f32.mrb[14].mxu0  ;;  %v783_v1 = vpop.f32.mrb[14].mxu1 }
 0x110   :  { %v655_v2 = vpack.c.bf16 %v767_v0, %v766_v60  ;;  %v695_v3 = vpack.c.bf16 %v783_v1, %v782_v61  ;;  %v289_v4 = vpop.f32.mrb[15].mxu0  ;;  %v353_v5 = vpop.f32.mrb[15].mxu1 }
 0x111   :  { %v650_v6 = vpack.c.bf16 %v289_v4, %v286_v62  ;;  %v690_v7 = vpack.c.bf16 %v353_v5, %v350_v63 }
 0x112   :  { %703 = vst [vmem:[%s961_s2 + $0x38] sm:$0xff] %v655_v2   ;;  %711 = vst [vmem:[%s961_s2 + $0x78] sm:$0xff] %v695_v3  }
 0x113   :  { %702 = vst [vmem:[%s961_s2 + $0x30] sm:$0xff] %v650_v6   ;;  %710 = vst [vmem:[%s961_s2 + $0x70] sm:$0xff] %v690_v7  }

// kernel: gcn_forward.5
= control target key start
LH: loop header
LB: loop body
LE: loop exit
PB: predicated region body
PF: predicated region fallthrough
CT: control target
= control target key end

     0   :  { %s1373_s15 = smov 0   ;;  %s1375_s16 = smov 0   ;;  %s1521_s0 = inlined_call_operand.vmem [shape: bf16[256,256], index: 0, kind: input, shape index: {}]   ;;  %s1522_s1 = inlined_call_operand.vmem [shape: bf16[256,128], index: 1, kind: input, shape index: {}]   ;;  %s1523_s2 = inlined_call_operand.vmem [shape: f32[1,128], index: 2, kind: input, shape index: {}]   ;;  %s1524_s3 = inlined_call_operand.vmem [shape: bf16[128,128], index: 3, kind: input, shape index: {}]   ;;  %s1525_s4 = inlined_call_operand.vmem [shape: bf16[256,128], index: 4, kind: output, shape index: {}]  }
   0x1   :  { %s1377_s17 = smov 0  }
   0x2 LB: > { %s26_s18 = sadd.s32 1, %s1342_s16  ;;  %p1011_p0 = scmp.ge.s32.totalorder %s1346_s17, 1  ;;  %s1346_s17 = sphi %s1377_s17, %s14_s17   ;;  %s1342_s16 = sphi %s1375_s16, %s1527_s16   ;;  %s1338_s15 = sphi %s1373_s15, %s1526_s15  }
   0x3   : > { %p28_p1 = scmp.ge.s32.totalorder %s26_s18, 2  ;;  %p183_p2 = scmp.lt.s32.totalorder %s1346_s17, 3 }
   0x5   : > { %s1529_s18 = smov (%p28_p1, %s26_s18), 0  ;;  %p184_p3 = pnand %p1011_p0, %p183_p2 }
   0x6   : > { %v1276_v0 = vld [vmem:[%s1522_s1 + $0x40] sm:$0xff] (!%p184_p3)   ;;  %s1012_s21 = sshll.u32 (!%p184_p3), %s1338_s15, 4  ;;  %v1278_v2 = vld [vmem:[%s1522_s1 + $0x48] sm:$0xff] (!%p184_p3)   ;;  %v1280_v4 = vld [vmem:[%s1522_s1 + $0x50] sm:$0xff] (!%p184_p3)  }
   0x7   : > { %187 = sbr.rel (%p184_p3) target bundleno = 536 (0x218), region = 36  ;;  %v1277_v1 = vld [vmem:[%s1522_s1] sm:$0xff] (!%p184_p3)   ;;  %1140 = vmatprep.subr.bf16.mxu0 (!%p184_p3), %v1276_v0  ;;  %v1279_v3 = vld [vmem:[%s1522_s1 + $0x8] sm:$0xff] (!%p184_p3)   ;;  %p216_p4 = scmp.lt.s32.totalorder (!%p184_p3), %s1012_s21, 31  ;;  %v1281_v5 = vld [vmem:[%s1522_s1 + $0x10] sm:$0xff] (!%p184_p3)  }
   0x8   : > { %1141 = vmatpush3.bf16.msra.mxu0 (!%p184_p3), %v1277_v1  ;;  %v1282_v6 = vld [vmem:[%s1522_s1 + $0x58] sm:$0xff] (!%p184_p3)   ;;  %v1284_v8 = vld [vmem:[%s1522_s1 + $0x60] sm:$0xff] (!%p184_p3)   ;;  %v1286_v10 = vld [vmem:[%s1522_s1 + $0x68] sm:$0xff] (!%p184_p3)  }
   0x9   : > { %1142 = vmatprep.subr.bf16.mxu0 (!%p184_p3), %v1278_v2  ;;  %v1283_v7 = vld [vmem:[%s1522_s1 + $0x18] sm:$0xff] (!%p184_p3)   ;;  %v1285_v9 = vld [vmem:[%s1522_s1 + $0x20] sm:$0xff] (!%p184_p3)   ;;  %v1287_v12 = vld [vmem:[%s1522_s1 + $0x28] sm:$0xff] (!%p184_p3)  }
   0xa   : > { %v1288_v13 = vld [vmem:[%s1522_s1 + $0x70] sm:$0xff] (!%p184_p3)   ;;  %v1290_v15 = vld [vmem:[%s1522_s1 + $0x78] sm:$0xff] (!%p184_p3)   ;;  %v1316_v17 = vld [vmem:[%s1524_s3] sm:$0xff] (!%p184_p3)  }
   0xb   : > { %v1289_v14 = vld [vmem:[%s1522_s1 + $0x30] sm:$0xff] (!%p184_p3)   ;;  %v1291_v16 = vld [vmem:[%s1522_s1 + $0x38] sm:$0xff] (!%p184_p3)   ;;  %v1317_v19 = vld [vmem:[%s1524_s3 + $0x8] sm:$0xff] (!%p184_p3)   ;;  %1220 = vmatprep.subr.bf16.mxu1 (!%p184_p3), %v1316_v17 }
   0xc   : > { %1143 = vmatpush3.bf16.msra.mxu0 (!%p184_p3), %v1279_v3  ;;  %v1318_v21 = vld [vmem:[%s1524_s3 + $0x10] sm:$0xff] (!%p184_p3)   ;;  %1221 = vmatpush3.bf16.msra.mxu1 (!%p184_p3), %v1316_v17  ;;  %v1319_v35 = vld [vmem:[%s1524_s3 + $0x18] sm:$0xff] (!%p184_p3)   ;;  %v1320_v36 = vld [vmem:[%s1524_s3 + $0x20] sm:$0xff] (!%p184_p3)  }
   0xd   : > { %1144 = vmatprep.subr.bf16.mxu0 (!%p184_p3), %v1280_v4  ;;  %1222 = vmatprep.subr.bf16.mxu1 (!%p184_p3), %v1317_v19  ;;  %v1321_v37 = vld [vmem:[%s1524_s3 + $0x28] sm:$0xff] (!%p184_p3)   ;;  %v1322_v38 = vld [vmem:[%s1524_s3 + $0x30] sm:$0xff] (!%p184_p3)   ;;  %v1323_v39 = vld [vmem:[%s1524_s3 + $0x38] sm:$0xff] (!%p184_p3)  }
   0xe   : > { %s1531_s21 = smov (!%p216_p4, %s1012_s21), 31  ;;  %v1490_v42 = vld [vmem:[%s1523_s2] ss:$0 sm:$0xff] }
   0xf   : > { %s1076_s10 = sshll.u32 %s1531_s21, 3  ;;  %s1016_s30 = sshll.u32 %s1531_s21, 2 }
  0x10   : > { %1145 = vmatpush3.bf16.msra.mxu0 %v1281_v5  ;;  %s1424_s15 = scalar_lea.vmem %s1521_s0, %s1076_s10  ;;  %1223 = vmatpush3.bf16.msra.mxu1 %v1317_v19  ;;  %s230_s7 = scalar_lea.vmem %s1525_s4, %s1016_s30 }
  0x11   : > { %1146 = vmatprep.subr.bf16.mxu0 %v1282_v6  ;;  %v1294_v11 = vld [vmem:[%s1424_s15 + $0x4] ss:$8 sps:$4 sm:$0xff]   ;;  %v1292_v18 = vld [vmem:[%s1424_s15] ss:$8 sps:$4 sm:$0xff]   ;;  %v1295_v20 = vld [vmem:[%s1424_s15 + $0x14] ss:$8 sps:$4 sm:$0xff]   ;;  %1224 = vmatprep.subr.bf16.mxu1 %v1318_v21 }
  0x12   : > { %530 = vmatprep.mubr.bf16.mxu0 %v1294_v11  ;;  %v1297_v22 = vld [vmem:[%s1424_s15 + $0x10] ss:$8 sps:$4 sm:$0xff]   ;;  %v1298_v23 = vld [vmem:[%s1424_s15 + $0x24] ss:$8 sps:$4 sm:$0xff]   ;;  %v1300_v24 = vld [vmem:[%s1424_s15 + $0x20] ss:$8 sps:$4 sm:$0xff]  }
  0x13   : > { %v1301_v25 = vld [vmem:[%s1424_s15 + $0x34] ss:$8 sps:$4 sm:$0xff]   ;;  %v1303_v26 = vld [vmem:[%s1424_s15 + $0x30] ss:$8 sps:$4 sm:$0xff]   ;;  %v1304_v27 = vld [vmem:[%s1424_s15 + $0x44] ss:$8 sps:$4 sm:$0xff]  }
  0x14   : > { %1147 = vmatpush3.bf16.msra.mxu0 %v1283_v7  ;;  %1225 = vmatpush3.bf16.msra.mxu1 %v1318_v21  ;;  %v1306_v28 = vld [vmem:[%s1424_s15 + $0x40] ss:$8 sps:$4 sm:$0xff]   ;;  %v1307_v29 = vld [vmem:[%s1424_s15 + $0x54] ss:$8 sps:$4 sm:$0xff]   ;;  %v1309_v30 = vld [vmem:[%s1424_s15 + $0x50] ss:$8 sps:$4 sm:$0xff]  }
  0x15   : > { %1148 = vmatprep.subr.bf16.mxu0 %v1284_v8  ;;  %v1310_v31 = vld [vmem:[%s1424_s15 + $0x64] ss:$8 sps:$4 sm:$0xff]   ;;  %v1312_v32 = vld [vmem:[%s1424_s15 + $0x60] ss:$8 sps:$4 sm:$0xff]   ;;  %v1313_v33 = vld [vmem:[%s1424_s15 + $0x74] ss:$8 sps:$4 sm:$0xff]   ;;  %1226 = vmatprep.subr.bf16.mxu1 %v1319_v35 }
  0x16   : > { %v1315_v34 = vld [vmem:[%s1424_s15 + $0x70] ss:$8 sps:$4 sm:$0xff]  }
  0x18   : > { %1149 = vmatpush3.bf16.msra.mxu0 %v1285_v9  ;;  %1227 = vmatpush3.bf16.msra.mxu1 %v1319_v35 }
  0x19   : > { %1150 = vmatprep.subr.bf16.mxu0 %v1286_v10  ;;  %1228 = vmatprep.subr.bf16.mxu1 %v1320_v36 }
  0x1c   : > { %1151 = vmatpush3.bf16.msra.mxu0 %v1287_v12  ;;  %1229 = vmatpush3.bf16.msra.mxu1 %v1320_v36 }
  0x1d   : > { %1152 = vmatprep.subr.bf16.mxu0 %v1288_v13  ;;  %1230 = vmatprep.subr.bf16.mxu1 %v1321_v37 }
  0x20   : > { %1153 = vmatpush3.bf16.msra.mxu0 %v1289_v14  ;;  %1231 = vmatpush3.bf16.msra.mxu1 %v1321_v37 }
  0x21   : > { %1154 = vmatprep.subr.bf16.mxu0 %v1290_v15  ;;  %1232 = vmatprep.subr.bf16.mxu1 %v1322_v38 }
  0x24   : > { %1155 = vmatpush3.bf16.msra.mxu0 %v1291_v16  ;;  %1233 = vmatpush3.bf16.msra.mxu1 %v1322_v38 }
  0x25   : > { %1234 = vmatprep.subr.bf16.mxu1 %v1323_v39 }
  0x27   : > { %531 = vmatmul.mubr.bf16.vlgmr.msra.gmra.mrb[0].mxu0 %v1292_v18 }
  0x28   : > { %538 = vmatprep.mubr.bf16.mxu0 %v1295_v20  ;;  %1235 = vmatpush3.bf16.msra.mxu1 %v1323_v39 }
  0x2f   : > { %539 = vmatmul.mubr.bf16.gmra.mrb[4].mxu0 %v1297_v22 }
  0x30   : > { %546 = vmatprep.mubr.bf16.mxu0 %v1298_v23 }
  0x37   : > { %547 = vmatmul.mubr.bf16.gmra.mrb[8].mxu0 %v1300_v24 }
  0x38   : > { %554 = vmatprep.mubr.bf16.mxu0 %v1301_v25 }
  0x3f   : > { %555 = vmatmul.mubr.bf16.gmra.mrb[12].mxu0 %v1303_v26 }
  0x40   : > { %562 = vmatprep.mubr.bf16.mxu0 %v1304_v27 }
  0x47   : > { %563 = vmatmul.mubr.bf16.gmra.mrb[16].mxu0 %v1306_v28 }
  0x48   : > { %570 = vmatprep.mubr.bf16.mxu0 %v1307_v29 }
  0x4f   : > { %571 = vmatmul.mubr.bf16.gmra.mrb[20].mxu0 %v1309_v30 }
  0x50   : > { %578 = vmatprep.mubr.bf16.mxu0 %v1310_v31 }
  0x57   : > { %579 = vmatmul.mubr.bf16.gmra.mrb[24].mxu0 %v1312_v32 }
  0x58   : > { %586 = vmatprep.mubr.bf16.mxu0 %v1313_v33 }
  0x5f   : > { %587 = vmatmul.mubr.bf16.gmra.mrb[28].mxu0 %v1315_v34 }
  0xfa   : > { %v1156_v40 = vpop.f32.mrb[0].mxu0 }
  0xfb   : > { %v1157_v41 = vpop.f32.mrb[1].mxu0 }
  0xfc   : > { %v1158_v43 = vadd.f32 %v1157_v41, %v1156_v40  ;;  %v1159_v44 = vpop.f32.mrb[2].mxu0 }
  0xfd   : > { %v1160_v45 = vpop.f32.mrb[3].mxu0 }
  0xfe   : > { %v1161_v46 = vadd.f32 %v1160_v45, %v1159_v44  ;;  %v653_v47 = vadd.f32 %v1158_v43, %v1490_v42 }
 0x100   : > { %v654_v48 = vadd.f32 %v1161_v46, %v1490_v42  ;;  %v669_v50 = vmax.f32 %v653_v47, 0.0 }
 0x102   : > { %v1162_v49 = vpop.f32.mrb[4].mxu0  ;;  %v670_v51 = vmax.f32 %v654_v48, 0.0 }
 0x103   : > { %v1163_v52 = vpop.f32.mrb[5].mxu0 }
 0x104   : > { %v1164_v53 = vadd.f32 %v1163_v52, %v1162_v49  ;;  %v1165_v54 = vpop.f32.mrb[6].mxu0  ;;  %v685_v55 = vpack.c.bf16 %v670_v51, %v669_v50 }
 0x105   : > { %v1166_v56 = vpop.f32.mrb[7].mxu0 }
 0x106   : > { %v655_v57 = vadd.f32 %v1164_v53, %v1490_v42  ;;  %v1167_v58 = vadd.f32 %v1166_v56, %v1165_v54  ;;  %1236 = vmatprep.mubr.bf16.mxu1 %v685_v55 }
 0x108   : > { %v656_v59 = vadd.f32 %v1167_v58, %v1490_v42  ;;  %v671_v60 = vmax.f32 %v655_v57, 0.0 }
 0x10a   : > { %v672_v61 = vmax.f32 %v656_v59, 0.0  ;;  %v1168_v62 = vpop.f32.mrb[8].mxu0 }
 0x10b   : > { %v1169_v63 = vpop.f32.mrb[9].mxu0 }
 0x10c   : > { %v1170_v0 = vadd.f32 %v1169_v63, %v1168_v62  ;;  %v1171_v1 = vpop.f32.mrb[10].mxu0  ;;  %v686_v2 = vpack.c.bf16 %v672_v61, %v671_v60 }
 0x10d   : > { %v1172_v3 = vpop.f32.mrb[11].mxu0 }
 0x10e   : > { %v657_v4 = vadd.f32 %v1170_v0, %v1490_v42  ;;  %v1173_v5 = vadd.f32 %v1172_v3, %v1171_v1  ;;  %1237 = vmatmul.mubr.bf16.vlgmr.msra.gmra.mrb[0].mxu1 %v686_v2 }
 0x110   : > { %v658_v6 = vadd.f32 %v1173_v5, %v1490_v42  ;;  %v673_v7 = vmax.f32 %v657_v4, 0.0 }
 0x112   : > { %v674_v8 = vmax.f32 %v658_v6, 0.0  ;;  %v1174_v9 = vpop.f32.mrb[12].mxu0 }
 0x113   : > { %v1175_v10 = vpop.f32.mrb[13].mxu0 }
 0x114   : > { %v1176_v11 = vadd.f32 %v1175_v10, %v1174_v9  ;;  %v1177_v12 = vpop.f32.mrb[14].mxu0  ;;  %v687_v13 = vpack.c.bf16 %v674_v8, %v673_v7 }
 0x115   : > { %v1178_v14 = vpop.f32.mrb[15].mxu0 }
 0x116   : > { %v659_v15 = vadd.f32 %v1176_v11, %v1490_v42  ;;  %v1179_v16 = vadd.f32 %v1178_v14, %v1177_v12  ;;  %1240 = vmatprep.mubr.bf16.mxu1 %v687_v13 }
 0x118   : > { %v660_v17 = vadd.f32 %v1179_v16, %v1490_v42  ;;  %v675_v18 = vmax.f32 %v659_v15, 0.0 }
 0x11a   : > { %v676_v19 = vmax.f32 %v660_v17, 0.0  ;;  %v1180_v20 = vpop.f32.mrb[16].mxu0 }
 0x11b   : > { %v1181_v21 = vpop.f32.mrb[17].mxu0 }
 0x11c   : > { %v1182_v22 = vadd.f32 %v1181_v21, %v1180_v20  ;;  %v1183_v23 = vpop.f32.mrb[18].mxu0  ;;  %v688_v24 = vpack.c.bf16 %v676_v19, %v675_v18 }
 0x11d   : > { %v1184_v25 = vpop.f32.mrb[19].mxu0 }
 0x11e   : > { %v661_v26 = vadd.f32 %v1182_v22, %v1490_v42  ;;  %v1185_v27 = vadd.f32 %v1184_v25, %v1183_v23  ;;  %1241 = vmatmul.mubr.bf16.gmra.mrb[4].mxu1 %v688_v24 }
 0x120   : > { %v662_v28 = vadd.f32 %v1185_v27, %v1490_v42  ;;  %v677_v29 = vmax.f32 %v661_v26, 0.0 }
 0x122   : > { %v678_v30 = vmax.f32 %v662_v28, 0.0  ;;  %v1186_v31 = vpop.f32.mrb[20].mxu0 }
 0x123   : > { %v1187_v32 = vpop.f32.mrb[21].mxu0 }
 0x124   : > { %v1188_v33 = vadd.f32 %v1187_v32, %v1186_v31  ;;  %v1189_v34 = vpop.f32.mrb[22].mxu0  ;;  %v689_v35 = vpack.c.bf16 %v678_v30, %v677_v29 }
 0x125   : > { %v1190_v36 = vpop.f32.mrb[23].mxu0 }
 0x126   : > { %v663_v37 = vadd.f32 %v1188_v33, %v1490_v42  ;;  %v1191_v38 = vadd.f32 %v1190_v36, %v1189_v34  ;;  %1244 = vmatprep.mubr.bf16.mxu1 %v689_v35 }
 0x128   : > { %v664_v39 = vadd.f32 %v1191_v38, %v1490_v42  ;;  %v679_v40 = vmax.f32 %v663_v37, 0.0 }
 0x12a   : > { %v680_v41 = vmax.f32 %v664_v39, 0.0  ;;  %v1192_v43 = vpop.f32.mrb[24].mxu0 }
 0x12b   : > { %v1193_v44 = vpop.f32.mrb[25].mxu0 }
 0x12c   : > { %v1194_v45 = vadd.f32 %v1193_v44, %v1192_v43  ;;  %v1195_v46 = vpop.f32.mrb[26].mxu0  ;;  %v690_v47 = vpack.c.bf16 %v680_v41, %v679_v40 }
 0x12d   : > { %v1196_v48 = vpop.f32.mrb[27].mxu0 }
 0x12e   : > { %v665_v49 = vadd.f32 %v1194_v45, %v1490_v42  ;;  %v1197_v50 = vadd.f32 %v1196_v48, %v1195_v46  ;;  %1245 = vmatmul.mubr.bf16.gmra.mrb[8].mxu1 %v690_v47 }
 0x130   : > { %v666_v51 = vadd.f32 %v1197_v50, %v1490_v42  ;;  %v681_v52 = vmax.f32 %v665_v49, 0.0 }
 0x132   : > { %v682_v53 = vmax.f32 %v666_v51, 0.0  ;;  %v1198_v54 = vpop.f32.mrb[28].mxu0 }
 0x133   : > { %v1199_v55 = vpop.f32.mrb[29].mxu0 }
 0x134   : > { %v1200_v56 = vadd.f32 %v1199_v55, %v1198_v54  ;;  %v1201_v57 = vpop.f32.mrb[30].mxu0  ;;  %v691_v58 = vpack.c.bf16 %v682_v53, %v681_v52 }
 0x135   : > { %v1202_v59 = vpop.f32.mrb[31].mxu0 }
 0x136   : > { %v667_v60 = vadd.f32 %v1200_v56, %v1490_v42  ;;  %v1203_v61 = vadd.f32 %v1202_v59, %v1201_v57  ;;  %1248 = vmatprep.mubr.bf16.mxu1 %v691_v58 }
 0x138   : > { %v668_v62 = vadd.f32 %v1203_v61, %v1490_v42  ;;  %v683_v63 = vmax.f32 %v667_v60, 0.0 }
 0x13a   : > { %v684_v0 = vmax.f32 %v668_v62, 0.0 }
 0x13c   : > { %v692_v1 = vpack.c.bf16 %v684_v0, %v683_v63 }
 0x13e   : > { %1249 = vmatmul.mubr.bf16.gmra.mrb[12].mxu1 %v692_v1 }
 0x1e1   : > { %v1238_v2 = vpop.f32.mrb[0].mxu1 }
 0x1e2   : > { %v791_v3 = vpop.f32.mrb[1].mxu1 }
 0x1e3   : > { %v1239_v4 = vpop.f32.mrb[2].mxu1 }
 0x1e4   : > { %v1101_v5 = vpack.c.bf16 %v1239_v4, %v1238_v2  ;;  %v794_v6 = vpop.f32.mrb[3].mxu1 }
 0x1e5   : > { %v1096_v7 = vpack.c.bf16 %v794_v6, %v791_v3 }
 0x1e6   : > { %1133 = vst [vmem:[%s230_s7 + $0x8] sm:$0xff] %v1101_v5  }
 0x1e7   : > { %1097 = vst [vmem:[%s230_s7] sm:$0xff] %v1096_v7  }
 0x1f1   : > { %v1242_v8 = vpop.f32.mrb[4].mxu1 }
 0x1f2   : > { %v807_v9 = vpop.f32.mrb[5].mxu1 }
 0x1f3   : > { %v1243_v42 = vpop.f32.mrb[6].mxu1 }
 0x1f4   : > { %v1111_v10 = vpack.c.bf16 %v1243_v42, %v1242_v8  ;;  %v810_v11 = vpop.f32.mrb[7].mxu1 }
 0x1f5   : > { %v1106_v12 = vpack.c.bf16 %v810_v11, %v807_v9 }
 0x1f6   : > { %1135 = vst [vmem:[%s230_s7 + $0x18] sm:$0xff] %v1111_v10  }
 0x1f7   : > { %1134 = vst [vmem:[%s230_s7 + $0x10] sm:$0xff] %v1106_v12  }
 0x201   : > { %v1246_v13 = vpop.f32.mrb[8].mxu1 }
 0x202   : > { %v823_v14 = vpop.f32.mrb[9].mxu1 }
 0x203   : > { %v1247_v15 = vpop.f32.mrb[10].mxu1 }
 0x204   : > { %v1121_v16 = vpack.c.bf16 %v1247_v15, %v1246_v13  ;;  %v826_v17 = vpop.f32.mrb[11].mxu1 }
 0x205   : > { %v1116_v18 = vpack.c.bf16 %v826_v17, %v823_v14 }
 0x206   : > { %1137 = vst [vmem:[%s230_s7 + $0x28] sm:$0xff] %v1121_v16  }
 0x207   : > { %1136 = vst [vmem:[%s230_s7 + $0x20] sm:$0xff] %v1116_v18  }
 0x211   : > { %v1250_v19 = vpop.f32.mrb[12].mxu1 }
 0x212   : > { %v839_v20 = vpop.f32.mrb[13].mxu1 }
 0x213   : > { %v1251_v21 = vpop.f32.mrb[14].mxu1 }
 0x214   : > { %v1131_v22 = vpack.c.bf16 %v1251_v21, %v1250_v19  ;;  %v842_v23 = vpop.f32.mrb[15].mxu1 }
 0x215   : > { %v1126_v24 = vpack.c.bf16 %v842_v23, %v839_v20 }
 0x216   : > { %1139 = vst [vmem:[%s230_s7 + $0x38] sm:$0xff] %v1131_v22  }
 0x217   : > { %1138 = vst [vmem:[%s230_s7 + $0x30] sm:$0xff] %v1126_v24  }
 0x218 PF: > { %s14_s17 = sadd.s32 1, %s1346_s17   ;;  %s1526_s15 = smov %s1342_s16 }
 0x219   : > { %p11_p5 = scmp.ge.s32.totalorder %s14_s17, 4   ;;  %s1527_s16 = smov %s1529_s18 }
 0x21b   :  { %13 = sbr.rel (!%p11_p5) target bundleno = 2 (0x2), region = 75 }

</bundles_post_ra>
